<compile_context>
chip_gen: v5e
topology: v5e:2x2
jax: 0.10.0
libtpu: 0.0.40
codegen_flags: <defaults>
</compile_context>

<pallas_src>
from functools import partial

import jax
import jax.numpy as jnp
from jax.experimental import pallas as pl
from jax.experimental.pallas import tpu as pltpu

CLIP_EPS = 0.2
VALUE_CLIP_EPS = 0.2
ENTROPY_COEF = 0.01
VALUE_LOSS_COEF = 0.5


def _ma_ppo_kernel(*args, n_agents, T, Tv, has_iw):
    # ---- unpack refs (inputs..., outputs..., scratch...) -------------------
    i = 0
    w_ref = args[i]; i += 1                                # VMEM (A, 1) agent weights
    lp_refs = args[i:i + n_agents]; i += n_agents          # A x VMEM (1, T)
    olp_refs = args[i:i + n_agents]; i += n_agents
    adv_refs = args[i:i + n_agents]; i += n_agents
    ent_refs = args[i:i + n_agents]; i += n_agents
    v_ref = args[i]; i += 1                                # VMEM (1, Tv)
    ov_ref = args[i]; i += 1
    ret_ref = args[i]; i += 1
    if has_iw:
        iw_ref = args[i]; i += 1                           # VMEM (1, T) (T == Tv)
    per_agent_ref = args[i]; i += 1                        # VMEM out (A, 3)
    scalars_ref = args[i]; i += 1                          # SMEM out (4,)
    lp_buf, olp_buf, adv_buf, ent_buf = args[i:i + 4]      # VMEM scratch (A, T)

    # ---- assemble (A, T) blocks in VMEM (cheap masked row stores) ----------
    for a in range(n_agents):
        lp_buf[a:a + 1, :] = lp_refs[a][...]
        olp_buf[a:a + 1, :] = olp_refs[a][...]
        adv_buf[a:a + 1, :] = adv_refs[a][...]
        ent_buf[a:a + 1, :] = ent_refs[a][...]

    lp = lp_buf[...]
    olp = olp_buf[...]
    adv = adv_buf[...]
    ent = ent_buf[...]

    inv_T = 1.0 / T
    inv_Tm1 = 1.0 / (T - 1)

    # per-agent advantage normalization (exact two-pass, unbiased std).
    mean = jnp.sum(adv, axis=-1, keepdims=True) * inv_T            # (A, 1)
    ctr = adv - mean
    var = jnp.sum(ctr * ctr, axis=-1, keepdims=True) * inv_Tm1     # (A, 1)
    inv_std = 1.0 / (jnp.sqrt(var) + 1e-8)                         # (A, 1)
    adv_n = ctr * inv_std

    delta = lp - olp
    ratio = jnp.exp(delta)

    if has_iw:
        iw = iw_ref[...]                  # (1, T) -> broadcasts over agents
        # importance weights are nonnegative, so min(s1, s2) * iw can be
        # folded as min(s1*iw, s2*iw): pre-scale the advantages once.
        aw = adv_n * iw
        ent_l = -ent * iw
    else:
        aw = adv_n
        ent_l = -ent

    surr1 = ratio * aw
    surr2 = jnp.clip(ratio, 1.0 - CLIP_EPS, 1.0 + CLIP_EPS) * aw
    pol = -jnp.minimum(surr1, surr2)                               # (A, T)

    pol_mean = jnp.sum(pol, axis=-1, keepdims=True) * inv_T        # (A, 1)
    ent_mean = jnp.sum(ent_l, axis=-1, keepdims=True) * inv_T      # (A, 1)
    # approx_kl = mean(ratio - 1 - log(ratio)); log(ratio) == lp - olp
    kl_mean = jnp.sum(ratio - 1.0 - delta, axis=-1, keepdims=True) * inv_T

    # per-agent stats -> one small VMEM vector store
    # (lane 0: policy_loss, lane 1: entropy_loss, lane 2: approx_kl)
    col = jax.lax.broadcasted_iota(jnp.int32, (n_agents, 3), 1)
    per_agent_ref[...] = jnp.where(col == 0, pol_mean,
                                   jnp.where(col == 1, ent_mean, kl_mean))

    w = w_ref[...]                                                 # (A, 1)
    total_policy = jnp.sum(w * pol_mean)
    total_entropy = jnp.sum(w * ent_mean)

    # centralized critic value loss with value clipping.
    v = v_ref[...]
    ov = ov_ref[...]
    ret = ret_ref[...]
    vpc = ov + jnp.clip(v - ov, -VALUE_CLIP_EPS, VALUE_CLIP_EPS)
    dv = v - ret
    dvc = vpc - ret
    vl = jnp.maximum(dv * dv, dvc * dvc)
    if has_iw:
        vl = vl * iw
    value_loss = jnp.sum(vl) * (1.0 / Tv)

    inv_A = 1.0 / n_agents
    policy_loss = total_policy * inv_A
    entropy_loss = total_entropy * inv_A
    total = policy_loss + VALUE_LOSS_COEF * value_loss + ENTROPY_COEF * entropy_loss

    scalars_ref[0] = total
    scalars_ref[1] = policy_loss
    scalars_ref[2] = value_loss
    scalars_ref[3] = entropy_loss


def multi_agent_ppo_loss(agent_log_probs, agent_old_log_probs, agent_advantages,
                         agent_entropies, centralized_values, centralized_old_values,
                         centralized_returns, importance_weights=None,
                         agent_loss_weights=None):
    names = list(agent_log_probs.keys())
    n_agents = len(names)
    T = int(agent_log_probs[names[0]].shape[0])
    Tv = int(centralized_values.shape[0])

    def row(x):
        return jnp.asarray(x, jnp.float32).reshape(1, -1)

    # No jnp.stack: each agent tensor is its own (1, T) input (kernel assembles
    # the (n_agents, T) blocks in VMEM).
    lp_l = [row(agent_log_probs[n]) for n in names]
    olp_l = [row(agent_old_log_probs[n]) for n in names]
    adv_l = [row(agent_advantages[n]) for n in names]
    ent_l = [row(agent_entropies[n]) for n in names]

    v = row(centralized_values)
    ov = row(centralized_old_values)
    ret = row(centralized_returns)

    has_iw = importance_weights is not None
    if has_iw:
        if Tv != T:
            raise ValueError("importance_weights require matching policy/value lengths")
        iw_args = [row(importance_weights)]   # DMA'd once, shared by policy & value
    else:
        iw_args = []

    wdict = agent_loss_weights or {}
    weights = jnp.array([[float(wdict.get(n, 1.0))] for n in names], jnp.float32)

    n_in = 1 + 4 * n_agents + 3 + (1 if has_iw else 0)

    # Whole problem is VMEM-resident (no grid). Raise the scoped-VMEM limit only
    # when it approaches v5e's 16 MiB default; cap under v7x's 64 MiB physical.
    est_bytes = 4 * (8 * n_agents * T + 3 * Tv + T + 64)
    compiler_params = None
    if est_bytes > 12 * 1024 * 1024:
        compiler_params = pltpu.CompilerParams(
            vmem_limit_bytes=int(min(2 * est_bytes, 56 * 1024 * 1024)))

    kernel = partial(_ma_ppo_kernel, n_agents=n_agents, T=T, Tv=Tv, has_iw=has_iw)
    per_agent, scalars = pl.pallas_call(
        kernel,
        out_shape=(jax.ShapeDtypeStruct((n_agents, 3), jnp.float32),
                   jax.ShapeDtypeStruct((4,), jnp.float32)),
        in_specs=[pl.BlockSpec(memory_space=pltpu.MemorySpace.VMEM)] * n_in,
        out_specs=(pl.BlockSpec(memory_space=pltpu.MemorySpace.VMEM),
                   pl.BlockSpec(memory_space=pltpu.MemorySpace.SMEM)),
        scratch_shapes=[pltpu.VMEM((n_agents, T), jnp.float32) for _ in range(4)],
        compiler_params=compiler_params,
    )(weights, *lp_l, *olp_l, *adv_l, *ent_l, v, ov, ret, *iw_args)

    out = {
        'total_loss': scalars[0],
        'policy_loss': scalars[1],
        'value_loss': scalars[2],
        'entropy_loss': scalars[3],
    }
    for i, name in enumerate(names):
        out[f'{name}_policy_loss'] = per_agent[i, 0]
        out[f'{name}_entropy'] = -per_agent[i, 1]
        out[f'{name}_kl'] = per_agent[i, 2]
    return out


def _reference(agent_log_probs, agent_old_log_probs, agent_advantages,
               agent_entropies, v, ov, ret, iw, agent_loss_weights=None):
    """Plain-JAX reference mirroring the PyTorch module."""
    names = list(agent_log_probs.keys())
    wdict = agent_loss_weights or {}
    total_policy = 0.0
    total_entropy = 0.0
    per_agent = {}
    for n in names:
        lp, olp = agent_log_probs[n], agent_old_log_probs[n]
        adv, ent = agent_advantages[n], agent_entropies[n]
        adv_n = (adv - adv.mean()) / (adv.std(ddof=1) + 1e-8)
        ratio = jnp.exp(lp - olp)
        surr1 = ratio * adv_n
        surr2 = jnp.clip(ratio, 1 - CLIP_EPS, 1 + CLIP_EPS) * adv_n
        pol = -jnp.minimum(surr1, surr2)
        entl = -ent
        if iw is not None:
            pol = pol * iw
            entl = entl * iw
        w = wdict.get(n, 1.0)
        total_policy += w * pol.mean()
        total_entropy += w * entl.mean()
        per_agent[f'{n}_policy_loss'] = pol.mean()
        per_agent[f'{n}_entropy'] = -entl.mean()
        per_agent[f'{n}_kl'] = (ratio - 1 - jnp.log(ratio)).mean()
    vpc = ov + jnp.clip(v - ov, -VALUE_CLIP_EPS, VALUE_CLIP_EPS)
    vl = jnp.maximum((v - ret) ** 2, (vpc - ret) ** 2)
    if iw is not None:
        vl = vl * iw
    value_loss = vl.mean()
    n_agents = len(names)
    total = (total_policy / n_agents + VALUE_LOSS_COEF * value_loss
             + ENTROPY_COEF * total_entropy / n_agents)
    return {'total_loss': total, 'policy_loss': total_policy / n_agents,
            'value_loss': value_loss, 'entropy_loss': total_entropy / n_agents,
            **per_agent}


if __name__ == "__main__":
    key = jax.random.PRNGKey(0)
    n_agents = 3
    T = 256  # per-agent batch of (state, action) samples

    names = [f"agent_{i}" for i in range(n_agents)]
    ks = jax.random.split(key, 4 * n_agents + 4)

    agent_lp, agent_olp, agent_adv, agent_ent = {}, {}, {}, {}
    for i, n in enumerate(names):
        agent_lp[n] = -jnp.abs(jax.random.normal(ks[4 * i + 0], (T,), jnp.float32))
        agent_olp[n] = agent_lp[n] + 0.1 * jax.random.normal(ks[4 * i + 1], (T,), jnp.float32)
        agent_adv[n] = jax.random.normal(ks[4 * i + 2], (T,), jnp.float32)
        agent_ent[n] = jnp.abs(jax.random.normal(ks[4 * i + 3], (T,), jnp.float32))

    v = jax.random.normal(ks[-4], (T,), jnp.float32)
    ov = v + 0.1 * jax.random.normal(ks[-3], (T,), jnp.float32)
    ret = v + 0.5 * jax.random.normal(ks[-2], (T,), jnp.float32)
    iw = jnp.abs(1.0 + 0.2 * jax.random.normal(ks[-1], (T,), jnp.float32))

    loss_weights = {"agent_0": 1.0, "agent_1": 0.5, "agent_2": 2.0}

    out = multi_agent_ppo_loss(agent_lp, agent_olp, agent_adv, agent_ent,
                               v, ov, ret, importance_weights=iw,
                               agent_loss_weights=loss_weights)
    jax.block_until_ready(out)

    ref = _reference(agent_lp, agent_olp, agent_adv, agent_ent,
                     v, ov, ret, iw, agent_loss_weights=loss_weights)
    for k_ in ref:
        assert jnp.allclose(out[k_], ref[k_], rtol=1e-5, atol=1e-5), (k_, out[k_], ref[k_])

    print("KERNEL_OK")
</pallas_src>

<mosaic_0001>
module attributes {stable_mosaic.version = 11 : i64} {
  func.func @_ma_ppo_kernel(%arg0: memref<3x1xf32, #tpu.memory_space<vmem>>, %arg1: memref<1x256xf32, #tpu.memory_space<vmem>>, %arg2: memref<1x256xf32, #tpu.memory_space<vmem>>, %arg3: memref<1x256xf32, #tpu.memory_space<vmem>>, %arg4: memref<1x256xf32, #tpu.memory_space<vmem>>, %arg5: memref<1x256xf32, #tpu.memory_space<vmem>>, %arg6: memref<1x256xf32, #tpu.memory_space<vmem>>, %arg7: memref<1x256xf32, #tpu.memory_space<vmem>>, %arg8: memref<1x256xf32, #tpu.memory_space<vmem>>, %arg9: memref<1x256xf32, #tpu.memory_space<vmem>>, %arg10: memref<1x256xf32, #tpu.memory_space<vmem>>, %arg11: memref<1x256xf32, #tpu.memory_space<vmem>>, %arg12: memref<1x256xf32, #tpu.memory_space<vmem>>, %arg13: memref<1x256xf32, #tpu.memory_space<vmem>>, %arg14: memref<1x256xf32, #tpu.memory_space<vmem>>, %arg15: memref<1x256xf32, #tpu.memory_space<vmem>>, %arg16: memref<1x256xf32, #tpu.memory_space<vmem>>, %arg17: memref<3x3xf32, #tpu.memory_space<vmem>>, %arg18: memref<4xf32, #tpu.memory_space<smem>>, %arg19: memref<3x256xf32, #tpu.memory_space<vmem>>, %arg20: memref<3x256xf32, #tpu.memory_space<vmem>>, %arg21: memref<3x256xf32, #tpu.memory_space<vmem>>, %arg22: memref<3x256xf32, #tpu.memory_space<vmem>>) attributes {dimension_semantics = [], scalar_prefetch = 0 : i64, scratch_operands = 4 : i64, tpu.core_type = #tpu.core_type<tc>} {
    %c0 = arith.constant 0 : index
    %c0_0 = arith.constant 0 : index
    %0 = vector.load %arg1[%c0, %c0_0] : memref<1x256xf32, #tpu.memory_space<vmem>>, vector<1x256xf32>
    %c0_1 = arith.constant 0 : index
    %c0_2 = arith.constant 0 : index
    %1 = vector.load %arg19[%c0_1, %c0_2] : memref<3x256xf32, #tpu.memory_space<vmem>>, vector<1x256xf32>
    tpu.vector_store %arg19[%c0_1, %c0_2], %0 {strides = array<i32>} : memref<3x256xf32, #tpu.memory_space<vmem>>, vector<1x256xf32>,
    %c0_3 = arith.constant 0 : index
    %c0_4 = arith.constant 0 : index
    %2 = vector.load %arg4[%c0_3, %c0_4] : memref<1x256xf32, #tpu.memory_space<vmem>>, vector<1x256xf32>
    %c0_5 = arith.constant 0 : index
    %c0_6 = arith.constant 0 : index
    %3 = vector.load %arg20[%c0_5, %c0_6] : memref<3x256xf32, #tpu.memory_space<vmem>>, vector<1x256xf32>
    tpu.vector_store %arg20[%c0_5, %c0_6], %2 {strides = array<i32>} : memref<3x256xf32, #tpu.memory_space<vmem>>, vector<1x256xf32>,
    %c0_7 = arith.constant 0 : index
    %c0_8 = arith.constant 0 : index
    %4 = vector.load %arg7[%c0_7, %c0_8] : memref<1x256xf32, #tpu.memory_space<vmem>>, vector<1x256xf32>
    %c0_9 = arith.constant 0 : index
    %c0_10 = arith.constant 0 : index
    %5 = vector.load %arg21[%c0_9, %c0_10] : memref<3x256xf32, #tpu.memory_space<vmem>>, vector<1x256xf32>
    tpu.vector_store %arg21[%c0_9, %c0_10], %4 {strides = array<i32>} : memref<3x256xf32, #tpu.memory_space<vmem>>, vector<1x256xf32>,
    %c0_11 = arith.constant 0 : index
    %c0_12 = arith.constant 0 : index
    %6 = vector.load %arg10[%c0_11, %c0_12] : memref<1x256xf32, #tpu.memory_space<vmem>>, vector<1x256xf32>
    %c0_13 = arith.constant 0 : index
    %c0_14 = arith.constant 0 : index
    %7 = vector.load %arg22[%c0_13, %c0_14] : memref<3x256xf32, #tpu.memory_space<vmem>>, vector<1x256xf32>
    tpu.vector_store %arg22[%c0_13, %c0_14], %6 {strides = array<i32>} : memref<3x256xf32, #tpu.memory_space<vmem>>, vector<1x256xf32>,
    %c0_15 = arith.constant 0 : index
    %c0_16 = arith.constant 0 : index
    %8 = vector.load %arg2[%c0_15, %c0_16] : memref<1x256xf32, #tpu.memory_space<vmem>>, vector<1x256xf32>
    %c1 = arith.constant 1 : index
    %c0_17 = arith.constant 0 : index
    %9 = vector.load %arg19[%c1, %c0_17] : memref<3x256xf32, #tpu.memory_space<vmem>>, vector<1x256xf32>
    tpu.vector_store %arg19[%c1, %c0_17], %8 {strides = array<i32>} : memref<3x256xf32, #tpu.memory_space<vmem>>, vector<1x256xf32>,
    %c0_18 = arith.constant 0 : index
    %c0_19 = arith.constant 0 : index
    %10 = vector.load %arg5[%c0_18, %c0_19] : memref<1x256xf32, #tpu.memory_space<vmem>>, vector<1x256xf32>
    %c1_20 = arith.constant 1 : index
    %c0_21 = arith.constant 0 : index
    %11 = vector.load %arg20[%c1_20, %c0_21] : memref<3x256xf32, #tpu.memory_space<vmem>>, vector<1x256xf32>
    tpu.vector_store %arg20[%c1_20, %c0_21], %10 {strides = array<i32>} : memref<3x256xf32, #tpu.memory_space<vmem>>, vector<1x256xf32>,
    %c0_22 = arith.constant 0 : index
    %c0_23 = arith.constant 0 : index
    %12 = vector.load %arg8[%c0_22, %c0_23] : memref<1x256xf32, #tpu.memory_space<vmem>>, vector<1x256xf32>
    %c1_24 = arith.constant 1 : index
    %c0_25 = arith.constant 0 : index
    %13 = vector.load %arg21[%c1_24, %c0_25] : memref<3x256xf32, #tpu.memory_space<vmem>>, vector<1x256xf32>
    tpu.vector_store %arg21[%c1_24, %c0_25], %12 {strides = array<i32>} : memref<3x256xf32, #tpu.memory_space<vmem>>, vector<1x256xf32>,
    %c0_26 = arith.constant 0 : index
    %c0_27 = arith.constant 0 : index
    %14 = vector.load %arg11[%c0_26, %c0_27] : memref<1x256xf32, #tpu.memory_space<vmem>>, vector<1x256xf32>
    %c1_28 = arith.constant 1 : index
    %c0_29 = arith.constant 0 : index
    %15 = vector.load %arg22[%c1_28, %c0_29] : memref<3x256xf32, #tpu.memory_space<vmem>>, vector<1x256xf32>
    tpu.vector_store %arg22[%c1_28, %c0_29], %14 {strides = array<i32>} : memref<3x256xf32, #tpu.memory_space<vmem>>, vector<1x256xf32>,
    %c0_30 = arith.constant 0 : index
    %c0_31 = arith.constant 0 : index
    %16 = vector.load %arg3[%c0_30, %c0_31] : memref<1x256xf32, #tpu.memory_space<vmem>>, vector<1x256xf32>
    %c2 = arith.constant 2 : index
    %c0_32 = arith.constant 0 : index
    %17 = vector.load %arg19[%c2, %c0_32] : memref<3x256xf32, #tpu.memory_space<vmem>>, vector<1x256xf32>
    tpu.vector_store %arg19[%c2, %c0_32], %16 {strides = array<i32>} : memref<3x256xf32, #tpu.memory_space<vmem>>, vector<1x256xf32>,
    %c0_33 = arith.constant 0 : index
    %c0_34 = arith.constant 0 : index
    %18 = vector.load %arg6[%c0_33, %c0_34] : memref<1x256xf32, #tpu.memory_space<vmem>>, vector<1x256xf32>
    %c2_35 = arith.constant 2 : index
    %c0_36 = arith.constant 0 : index
    %19 = vector.load %arg20[%c2_35, %c0_36] : memref<3x256xf32, #tpu.memory_space<vmem>>, vector<1x256xf32>
    tpu.vector_store %arg20[%c2_35, %c0_36], %18 {strides = array<i32>} : memref<3x256xf32, #tpu.memory_space<vmem>>, vector<1x256xf32>,
    %c0_37 = arith.constant 0 : index
    %c0_38 = arith.constant 0 : index
    %20 = vector.load %arg9[%c0_37, %c0_38] : memref<1x256xf32, #tpu.memory_space<vmem>>, vector<1x256xf32>
    %c2_39 = arith.constant 2 : index
    %c0_40 = arith.constant 0 : index
    %21 = vector.load %arg21[%c2_39, %c0_40] : memref<3x256xf32, #tpu.memory_space<vmem>>, vector<1x256xf32>
    tpu.vector_store %arg21[%c2_39, %c0_40], %20 {strides = array<i32>} : memref<3x256xf32, #tpu.memory_space<vmem>>, vector<1x256xf32>,
    %c0_41 = arith.constant 0 : index
    %c0_42 = arith.constant 0 : index
    %22 = vector.load %arg12[%c0_41, %c0_42] : memref<1x256xf32, #tpu.memory_space<vmem>>, vector<1x256xf32>
    %c2_43 = arith.constant 2 : index
    %c0_44 = arith.constant 0 : index
    %23 = vector.load %arg22[%c2_43, %c0_44] : memref<3x256xf32, #tpu.memory_space<vmem>>, vector<1x256xf32>
    tpu.vector_store %arg22[%c2_43, %c0_44], %22 {strides = array<i32>} : memref<3x256xf32, #tpu.memory_space<vmem>>, vector<1x256xf32>,
    %c0_45 = arith.constant 0 : index
    %c0_46 = arith.constant 0 : index
    %24 = vector.load %arg19[%c0_45, %c0_46] : memref<3x256xf32, #tpu.memory_space<vmem>>, vector<3x256xf32>
    %c0_47 = arith.constant 0 : index
    %c0_48 = arith.constant 0 : index
    %25 = vector.load %arg20[%c0_47, %c0_48] : memref<3x256xf32, #tpu.memory_space<vmem>>, vector<3x256xf32>
    %c0_49 = arith.constant 0 : index
    %c0_50 = arith.constant 0 : index
    %26 = vector.load %arg21[%c0_49, %c0_50] : memref<3x256xf32, #tpu.memory_space<vmem>>, vector<3x256xf32>
    %c0_51 = arith.constant 0 : index
    %c0_52 = arith.constant 0 : index
    %27 = vector.load %arg22[%c0_51, %c0_52] : memref<3x256xf32, #tpu.memory_space<vmem>>, vector<3x256xf32>
    %cst = arith.constant dense<0.000000e+00> : vector<3xf32>
    %28 = vector.multi_reduction <add>, %26, %cst [1] : vector<3x256xf32> to vector<3xf32>
    %29 = vector.shape_cast %28 : vector<3xf32> to vector<3x1xf32>
    %cst_53 = arith.constant 3.906250e-03 : f32
    %30 = vector.broadcast %cst_53 : f32 to vector<3x1xf32>
    %31 = arith.mulf %29, %30 : vector<3x1xf32>
    %32 = vector.broadcast %31 : vector<3x1xf32> to vector<3x256xf32>
    %33 = arith.subf %26, %32 : vector<3x256xf32>
    %34 = arith.mulf %33, %33 : vector<3x256xf32>
    %cst_54 = arith.constant dense<0.000000e+00> : vector<3xf32>
    %35 = vector.multi_reduction <add>, %34, %cst_54 [1] : vector<3x256xf32> to vector<3xf32>
    %36 = vector.shape_cast %35 : vector<3xf32> to vector<3x1xf32>
    %cst_55 = arith.constant 0.00392156886 : f32
    %37 = vector.broadcast %cst_55 : f32 to vector<3x1xf32>
    %38 = arith.mulf %36, %37 : vector<3x1xf32>
    %39 = math.sqrt %38 : vector<3x1xf32>
    %cst_56 = arith.constant 9.99999993E-9 : f32
    %40 = vector.broadcast %cst_56 : f32 to vector<3x1xf32>
    %41 = arith.addf %39, %40 : vector<3x1xf32>
    %cst_57 = arith.constant 1.000000e+00 : f32
    %42 = vector.broadcast %cst_57 : f32 to vector<3x1xf32>
    %43 = arith.divf %42, %41 : vector<3x1xf32>
    %44 = vector.broadcast %43 : vector<3x1xf32> to vector<3x256xf32>
    %45 = arith.mulf %33, %44 : vector<3x256xf32>
    %46 = arith.subf %24, %25 : vector<3x256xf32>
    %47 = math.exp %46 : vector<3x256xf32>
    %c0_58 = arith.constant 0 : index
    %c0_59 = arith.constant 0 : index
    %48 = vector.load %arg16[%c0_58, %c0_59] : memref<1x256xf32, #tpu.memory_space<vmem>>, vector<1x256xf32>
    %49 = vector.broadcast %48 : vector<1x256xf32> to vector<3x256xf32>
    %50 = arith.mulf %45, %49 : vector<3x256xf32>
    %cst_60 = arith.constant 0.000000e+00 : f32
    %51 = vector.broadcast %cst_60 : f32 to vector<3x256xf32>
    %52 = arith.subf %51, %27 : vector<3x256xf32>
    %53 = vector.broadcast %48 : vector<1x256xf32> to vector<3x256xf32>
    %54 = arith.mulf %52, %53 : vector<3x256xf32>
    %55 = arith.mulf %47, %50 : vector<3x256xf32>
    %cst_61 = arith.constant 8.000000e-01 : f32
    %cst_62 = arith.constant 1.200000e+00 : f32
    %56 = vector.broadcast %cst_61 : f32 to vector<3x256xf32>
    %57 = arith.maximumf %56, %47 : vector<3x256xf32>
    %58 = vector.broadcast %cst_62 : f32 to vector<3x256xf32>
    %59 = arith.minimumf %58, %57 : vector<3x256xf32>
    %60 = arith.mulf %59, %50 : vector<3x256xf32>
    %61 = arith.minimumf %55, %60 : vector<3x256xf32>
    %cst_63 = arith.constant 0.000000e+00 : f32
    %62 = vector.broadcast %cst_63 : f32 to vector<3x256xf32>
    %63 = arith.subf %62, %61 : vector<3x256xf32>
    %cst_64 = arith.constant dense<0.000000e+00> : vector<3xf32>
    %64 = vector.multi_reduction <add>, %63, %cst_64 [1] : vector<3x256xf32> to vector<3xf32>
    %65 = vector.shape_cast %64 : vector<3xf32> to vector<3x1xf32>
    %cst_65 = arith.constant 3.906250e-03 : f32
    %66 = vector.broadcast %cst_65 : f32 to vector<3x1xf32>
    %67 = arith.mulf %65, %66 : vector<3x1xf32>
    %cst_66 = arith.constant dense<0.000000e+00> : vector<3xf32>
    %68 = vector.multi_reduction <add>, %54, %cst_66 [1] : vector<3x256xf32> to vector<3xf32>
    %69 = vector.shape_cast %68 : vector<3xf32> to vector<3x1xf32>
    %cst_67 = arith.constant 3.906250e-03 : f32
    %70 = vector.broadcast %cst_67 : f32 to vector<3x1xf32>
    %71 = arith.mulf %69, %70 : vector<3x1xf32>
    %cst_68 = arith.constant 1.000000e+00 : f32
    %72 = vector.broadcast %cst_68 : f32 to vector<3x256xf32>
    %73 = arith.subf %47, %72 : vector<3x256xf32>
    %74 = arith.subf %73, %46 : vector<3x256xf32>
    %cst_69 = arith.constant dense<0.000000e+00> : vector<3xf32>
    %75 = vector.multi_reduction <add>, %74, %cst_69 [1] : vector<3x256xf32> to vector<3xf32>
    %76 = vector.shape_cast %75 : vector<3xf32> to vector<3x1xf32>
    %cst_70 = arith.constant 3.906250e-03 : f32
    %77 = vector.broadcast %cst_70 : f32 to vector<3x1xf32>
    %78 = arith.mulf %76, %77 : vector<3x1xf32>
    %79 = tpu.iota {dimensions = array<i32: 1>} : vector<3x3xi32>
    %c0_i32 = arith.constant 0 : i32
    %80 = vector.broadcast %c0_i32 : i32 to vector<3x3xi32>
    %81 = arith.cmpi eq, %79, %80 : vector<3x3xi32>
    %c1_i32 = arith.constant 1 : i32
    %82 = vector.broadcast %c1_i32 : i32 to vector<3x3xi32>
    %83 = arith.cmpi eq, %79, %82 : vector<3x3xi32>
    %84 = vector.shape_cast %71 : vector<3x1xf32> to vector<3x1xf32>
    %85 = vector.broadcast %84 : vector<3x1xf32> to vector<3x3xf32>
    %86 = vector.shape_cast %78 : vector<3x1xf32> to vector<3x1xf32>
    %87 = vector.broadcast %86 : vector<3x1xf32> to vector<3x3xf32>
    %88 = arith.select %83, %85, %87 : vector<3x3xi1>, vector<3x3xf32>
    %89 = vector.shape_cast %67 : vector<3x1xf32> to vector<3x1xf32>
    %90 = vector.broadcast %89 : vector<3x1xf32> to vector<3x3xf32>
    %91 = arith.select %81, %90, %88 : vector<3x3xi1>, vector<3x3xf32>
    %c0_71 = arith.constant 0 : index
    %c0_72 = arith.constant 0 : index
    %92 = vector.load %arg17[%c0_71, %c0_72] : memref<3x3xf32, #tpu.memory_space<vmem>>, vector<3x3xf32>
    tpu.vector_store %arg17[%c0_71, %c0_72], %91 {strides = array<i32>} : memref<3x3xf32, #tpu.memory_space<vmem>>, vector<3x3xf32>,
    %c0_73 = arith.constant 0 : index
    %c0_74 = arith.constant 0 : index
    %93 = vector.load %arg0[%c0_73, %c0_74] : memref<3x1xf32, #tpu.memory_space<vmem>>, vector<3x1xf32>
    %94 = arith.mulf %93, %67 : vector<3x1xf32>
    %95 = vector.shape_cast %94 : vector<3x1xf32> to vector<1x3x1xf32>
    %cst_75 = arith.constant dense<0.000000e+00> : vector<1xf32>
    %96 = vector.multi_reduction <add>, %95, %cst_75 [1, 2] : vector<1x3x1xf32> to vector<1xf32>
    %97 = vector.shape_cast %96 : vector<1xf32> to vector<1x1x1xf32>
    %98 = vector.extract %97[0, 0, 0] : f32 from vector<1x1x1xf32>
    %99 = arith.mulf %93, %71 : vector<3x1xf32>
    %100 = vector.shape_cast %99 : vector<3x1xf32> to vector<1x3x1xf32>
    %cst_76 = arith.constant dense<0.000000e+00> : vector<1xf32>
    %101 = vector.multi_reduction <add>, %100, %cst_76 [1, 2] : vector<1x3x1xf32> to vector<1xf32>
    %102 = vector.shape_cast %101 : vector<1xf32> to vector<1x1x1xf32>
    %103 = vector.extract %102[0, 0, 0] : f32 from vector<1x1x1xf32>
    %c0_77 = arith.constant 0 : index
    %c0_78 = arith.constant 0 : index
    %104 = vector.load %arg13[%c0_77, %c0_78] : memref<1x256xf32, #tpu.memory_space<vmem>>, vector<1x256xf32>
    %c0_79 = arith.constant 0 : index
    %c0_80 = arith.constant 0 : index
    %105 = vector.load %arg14[%c0_79, %c0_80] : memref<1x256xf32, #tpu.memory_space<vmem>>, vector<1x256xf32>
    %c0_81 = arith.constant 0 : index
    %c0_82 = arith.constant 0 : index
    %106 = vector.load %arg15[%c0_81, %c0_82] : memref<1x256xf32, #tpu.memory_space<vmem>>, vector<1x256xf32>
    %107 = arith.subf %104, %105 : vector<1x256xf32>
    %cst_83 = arith.constant -2.000000e-01 : f32
    %cst_84 = arith.constant 2.000000e-01 : f32
    %108 = vector.broadcast %cst_83 : f32 to vector<1x256xf32>
    %109 = arith.maximumf %108, %107 : vector<1x256xf32>
    %110 = vector.broadcast %cst_84 : f32 to vector<1x256xf32>
    %111 = arith.minimumf %110, %109 : vector<1x256xf32>
    %112 = arith.addf %105, %111 : vector<1x256xf32>
    %113 = arith.subf %104, %106 : vector<1x256xf32>
    %114 = arith.subf %112, %106 : vector<1x256xf32>
    %115 = arith.mulf %113, %113 : vector<1x256xf32>
    %116 = arith.mulf %114, %114 : vector<1x256xf32>
    %117 = arith.maximumf %115, %116 : vector<1x256xf32>
    %118 = arith.mulf %117, %48 : vector<1x256xf32>
    %119 = vector.shape_cast %118 : vector<1x256xf32> to vector<1x1x256xf32>
    %cst_85 = arith.constant dense<0.000000e+00> : vector<1xf32>
    %120 = vector.multi_reduction <add>, %119, %cst_85 [1, 2] : vector<1x1x256xf32> to vector<1xf32>
    %121 = vector.shape_cast %120 : vector<1xf32> to vector<1x1x1xf32>
    %122 = vector.extract %121[0, 0, 0] : f32 from vector<1x1x1xf32>
    %cst_86 = arith.constant 3.906250e-03 : f32
    %123 = arith.mulf %122, %cst_86 : f32
    %cst_87 = arith.constant 0.333333343 : f32
    %124 = arith.mulf %98, %cst_87 : f32
    %cst_88 = arith.constant 0.333333343 : f32
    %125 = arith.mulf %103, %cst_88 : f32
    %cst_89 = arith.constant 5.000000e-01 : f32
    %126 = arith.mulf %cst_89, %123 : f32
    %127 = arith.addf %124, %126 : f32
    %cst_90 = arith.constant 0.00999999977 : f32
    %128 = arith.mulf %cst_90, %125 : f32
    %129 = arith.addf %127, %128 : f32
    %c0_91 = arith.constant 0 : index
    %130 = memref.load %arg18[%c0_91] : memref<4xf32, #tpu.memory_space<smem>>
    memref.store %129, %arg18[%c0_91] : memref<4xf32, #tpu.memory_space<smem>>
    %c1_92 = arith.constant 1 : index
    %131 = memref.load %arg18[%c1_92] : memref<4xf32, #tpu.memory_space<smem>>
    memref.store %124, %arg18[%c1_92] : memref<4xf32, #tpu.memory_space<smem>>
    %c2_93 = arith.constant 2 : index
    %132 = memref.load %arg18[%c2_93] : memref<4xf32, #tpu.memory_space<smem>>
    memref.store %123, %arg18[%c2_93] : memref<4xf32, #tpu.memory_space<smem>>
    %c3 = arith.constant 3 : index
    %133 = memref.load %arg18[%c3] : memref<4xf32, #tpu.memory_space<smem>>
    memref.store %125, %arg18[%c3] : memref<4xf32, #tpu.memory_space<smem>>
    return
  }
}

</mosaic_0001>

<bundles_post_ra>
// kernel: tpu_custom_call.1
= control target key start
LH: loop header
LB: loop body
LE: loop exit
PB: predicated region body
PF: predicated region fallthrough
CT: control target
= control target key end

     0   :  { %s845_s0 = inlined_call_operand.vmem [shape: f32[3,1], index: 0, kind: input, shape index: {}]   ;;  %s846_s1 = inlined_call_operand.vmem [shape: f32[1,256], index: 1, kind: input, shape index: {}]   ;;  %s847_s2 = inlined_call_operand.vmem [shape: f32[1,256], index: 2, kind: input, shape index: {}]   ;;  %s848_s3 = inlined_call_operand.vmem [shape: f32[1,256], index: 3, kind: input, shape index: {}]   ;;  %s849_s4 = inlined_call_operand.vmem [shape: f32[1,256], index: 4, kind: input, shape index: {}]   ;;  %s850_s5 = inlined_call_operand.hbm [shape: f32[1,256], index: 5, kind: input, shape index: {}]   ;;  %s851_s6 = inlined_call_operand.vmem [shape: f32[1,256], index: 6, kind: input, shape index: {}]   ;;  %s852_s7 = inlined_call_operand.hbm [shape: f32[1,256], index: 7, kind: input, shape index: {}]   ;;  %s853_s8 = inlined_call_operand.vmem [shape: f32[1,256], index: 8, kind: input, shape index: {}]   ;;  %s854_s9 = inlined_call_operand.hbm [shape: f32[1,256], index: 9, kind: input, shape index: {}]   ;;  %s855_s10 = inlined_call_operand.vmem [shape: f32[1,256], index: 10, kind: input, shape index: {}]   ;;  %s856_s11 = inlined_call_operand.hbm [shape: f32[1,256], index: 11, kind: input, shape index: {}]   ;;  %s857_s12 = inlined_call_operand.vmem [shape: f32[1,256], index: 12, kind: input, shape index: {}]   ;;  %s858_s13 = inlined_call_operand.hbm [shape: f32[1,256], index: 13, kind: input, shape index: {}]   ;;  %s859_s14 = inlined_call_operand.vmem [shape: f32[1,256], index: 14, kind: input, shape index: {}]   ;;  %s860_s15 = inlined_call_operand.hbm [shape: f32[1,256], index: 15, kind: input, shape index: {}]   ;;  %s861_s16 = inlined_call_operand.vmem [shape: f32[1,256], index: 16, kind: input, shape index: {}]   ;;  %s862_s17 = inlined_call_operand.hbm [shape: f32[3,3], index: 17, kind: output, shape index: {0}]   ;;  %s863_s18 = inlined_call_operand.hbm [shape: f32[4], index: 18, kind: output, shape index: {1}]  }
   0x1   :  { %864 = sst [smem:[#allocation26_spill]] %s845_s0 }
   0x2   :  { %865 = sst [smem:[#allocation27_spill]] %s846_s1 }
   0x3   :  { %866 = sst [smem:[#allocation28_spill]] %s847_s2 }
   0x4   :  { %24 = vsyncpa [#allocation7], 0 }
   0x5   :  { %25 = vsyncpa [#allocation11], 0 }
   0x6   :  { %26 = vsyncpa [#allocation14], 0 }
   0x7   :  { %27 = vsyncpa [#allocation17], 0 }
   0x8   :  { %28 = vsyncpa [#allocation8], 0  ;;  %s58_s29 = sshll.u32 %s852_s7, 4  ;;  %s59_s29 = int_to_ptr.hbm [resolvable:$true] %s58_s29 }
   0x9   :  { %29 = vsyncpa [#allocation9], 0  ;;  %s636_s30 = smov [#allocation10]   ;;  %s84_s20 = sshll.u32 %s856_s11, 4  ;;  %s85_s20 = int_to_ptr.hbm [resolvable:$true] %s84_s20 }
   0xa   :  { %s60_s0 = sshll.u32 %s636_s30, 4  ;;  %s637_s21 = smov [#allocation13]   ;;  %s61_s0 = int_to_ptr.vmem [resolvable:$true] %s60_s0 }
   0xb   :  { %63 = dma.hbm_to_vmem [thread:$0]  %s59_s29, 32, %s61_s0, [#allocation11]  }
   0xc   :  { %s86_s22 = sshll.u32 %s637_s21, 4  ;;  %s45_s24 = sshll.u32 %s850_s5, 4  ;;  %s87_s22 = int_to_ptr.vmem [resolvable:$true] %s86_s22  ;;  %s46_s24 = int_to_ptr.hbm [resolvable:$true] %s45_s24 }
   0xd   :  { %89 = dma.hbm_to_vmem [thread:$0]  %s85_s20, 32, %s87_s22, [#allocation14]  }
   0xe   :  { %s71_s26 = sshll.u32 %s854_s9, 4  ;;  %s638_s27 = smov [#allocation6]   ;;  %s72_s26 = int_to_ptr.hbm [resolvable:$true] %s71_s26 }
   0xf   :  { %s47_s28 = sshll.u32 %s638_s27, 4  ;;  %s639_s11 = smov [#allocation12]   ;;  %s48_s28 = int_to_ptr.vmem [resolvable:$true] %s47_s28 }
  0x10   :  { %50 = dma.hbm_to_vmem [thread:$0]  %s46_s24, 32, %s48_s28, [#allocation7]  }
  0x11   :  { %s73_s29 = sshll.u32 %s639_s11, 4  ;;  %s97_s19 = sshll.u32 %s858_s13, 4  ;;  %s74_s29 = int_to_ptr.vmem [resolvable:$true] %s73_s29  ;;  %s98_s19 = int_to_ptr.hbm [resolvable:$true] %s97_s19 }
  0x12   :  { %76 = dma.hbm_to_vmem [thread:$0]  %s72_s26, 32, %s74_s29, [#allocation11]  }
  0x13   :  { %s110_s20 = sshll.u32 %s860_s15, 4  ;;  %s640_s21 = smov [#allocation15]   ;;  %s111_s20 = int_to_ptr.hbm [resolvable:$true] %s110_s20 }
  0x14   :  { %s99_s9 = sshll.u32 %s640_s21, 4  ;;  %s641_s22 = smov [#allocation16]   ;;  %s100_s9 = int_to_ptr.vmem [resolvable:$true] %s99_s9 }
  0x15   :  { %102 = dma.hbm_to_vmem [thread:$0]  %s98_s19, 32, %s100_s9, [#allocation14]  }
  0x16   :  { %s112_s2 = sshll.u32 %s641_s22, 4  ;;  %s113_s2 = int_to_ptr.vmem [resolvable:$true] %s112_s2 }
  0x17   :  { %115 = dma.hbm_to_vmem [thread:$0]  %s111_s20, 32, %s113_s2, [#allocation17]  }
  0x18   :  { %624 = dma.done.wait [#allocation7], 32  }
  0x19   :  { %625 = vsyncadd [#allocation7], 4294967264 }
  0x1a   :  { %626 = dma.done.wait [#allocation11], 64  }
  0x1b   :  { %627 = vsyncadd [#allocation11], 4294967232 }
  0x1c   :  { %628 = dma.done.wait [#allocation14], 64  }
  0x1d   :  { %629 = vsyncadd [#allocation14], 4294967232 }
  0x1e   :  { %630 = dma.done.wait [#allocation17], 32  }
  0x1f   :  { %631 = vsyncadd [#allocation17], 4294967264  ;;  %v143_v0 = vlaneseq  ;;  %v150_v2 = vld [vmem:[#allocation10] sm:$0x3]  ;;  %v160_v3 = vld [vmem:[%s853_s8] sm:$0x3] }
  0x20   :  { %v172_v4 = vld [vmem:[#allocation12] sm:$0x3]  ;;  %vm188_vm1 = vcmask 1042432   ;;  %v152_v11 = vld [vmem:[%s855_s10] sm:$0x3]  ;;  %s869_s25 = sld [smem:[#allocation28_spill]] }
  0x21   :  { %vm759_vm0 = vcmp.lt.s32.totalorder %v143_v0, 256  ;;  %v157_v13 = vld [vmem:[#allocation6] sm:$0x3]  ;;  %v163_v14 = vld [vmem:[#allocation13] sm:$0x3]  ;;  %vm258_vm7 = vcmask 1043456  }
  0x22   :  { %151 = vst.msk [vmem:[#allocation4] ss:$4 sm:$0x3] %vm759_vm0, %v150_v2  ;;  %v166_v15 = vld [vmem:[%s848_s3] sm:$0x3]  ;;  %vm358_vm9 = vcmask 1040384  }
  0x23   :  { %162 = vst.msk [vmem:[#allocation4 + $0x1] ss:$4 sm:$0x3] %vm759_vm0, %v160_v3  ;;  %v169_v16 = vld [vmem:[%s851_s6] sm:$0x3]  ;;  %s871_s20 = sld [smem:[#allocation26_spill]] }
  0x24   :  { %174 = vst.msk [vmem:[#allocation4 + $0x2] ss:$4 sm:$0x3] %vm759_vm0, %v172_v4  ;;  %v175_v17 = vld [vmem:[%s857_s12] sm:$0x3]  ;;  %s870_s12 = sld [smem:[#allocation27_spill]] }
  0x25   :  { %153 = vst.msk [vmem:[#allocation5] ss:$4 sm:$0x3] %vm759_vm0, %v152_v11  ;;  %v642_v18 = vmov 839922192   ;;  %vm318_vm10 = vcmask 2048  }
  0x26   :  { %v154_v12 = vld [vmem:[%s869_s25] sm:$0x3]  ;;  %159 = vst.msk [vmem:[#allocation3 + $0x1] ss:$4 sm:$0x3] %vm759_vm0, %v157_v13  ;;  %v801_v19 = vunpack.c.l.s4 %v642_v18  ;;  %vm314_vm13 = vcmask 18432  }
  0x27   :  { %156 = vst.msk [vmem:[#allocation2 + $0x1] ss:$4 sm:$0x3] %vm759_vm0, %v154_v12  ;;  %v148_v32 = vld [vmem:[%s849_s4] sm:$0x3]  ;;  %s643_s21 = smov [#allocation18]  }
  0x28   :  { %165 = vst.msk [vmem:[#allocation5 + $0x1] ss:$4 sm:$0x3] %vm759_vm0, %v163_v14  ;;  %v198_v20 = vunpack.c.0.s8 %v801_v19  ;;  %v821_v51 = vld [vmem:[%s861_s16] sm:$0x3]  ;;  %s391_s9 = sshll.u32 %s643_s21, 4  ;;  %s392_s9 = int_to_ptr.vmem [resolvable:$true] %s391_s9 }
  0x29   :  { %168 = vst.msk [vmem:[#allocation2 + $0x2] ss:$4 sm:$0x3] %vm759_vm0, %v166_v15  ;;  %v256_v54 = vperm.slane %v821_v51, 1  ;;  %v255_v60 = vperm.slane %v821_v51, 0  ;;  %s393_s13 = sshll.u32 %s862_s17, 4  ;;  %s394_s13 = int_to_ptr.hbm [resolvable:$true] %s393_s13 }
  0x2a   :  { %171 = vst.msk [vmem:[#allocation3 + $0x2] ss:$4 sm:$0x3] %vm759_vm0, %v169_v16  ;;  %v142_v31 = vld [vmem:[%s870_s12] sm:$0x3]  ;;  %s402_s10 = sshll.u32 %s863_s18, 4  ;;  %s403_s10 = int_to_ptr.hbm [resolvable:$true] %s402_s10 }
  0x2b   :  { %v180_v5 = vld [vmem:[#allocation4] sm:$0x77]  ;;  %177 = vst.msk [vmem:[#allocation5 + $0x2] ss:$4 sm:$0x3] %vm759_vm0, %v175_v17  ;;  %v257_v61 = vrot.slane %v256_v54, 4 }
  0x2c   :  { %183 = vst [vmem:[#allocation1] ss:$2 sm:$0xff] %v180_v5  ;;  %s644_s3 = smov [#allocation19]  }
  0x2d   :  { %147 = vst.msk [vmem:[#allocation2] ss:$4 sm:$0x3] %vm759_vm0, %v142_v31  ;;  %v259_v4 = vsel %vm258_vm7, %v255_v60, %v257_v61 }
  0x2e   :  { %149 = vst.msk [vmem:[#allocation3] ss:$4 sm:$0x3] %vm759_vm0, %v148_v32  ;;  %v340_v32 = vld [vmem:[#allocation15] sm:$0x3] }
  0x32   :  { %v181_v11 = vld [vmem:[#allocation5] sm:$0x77] }
  0x33   :  { %v184_v6 = vld.sshfl [vmem:[#allocation1] sm:$0xff pattern:$0x75316420]  ;;  %v185_v7 = vld.sshfl [vmem:[#allocation1 + $0x8] sm:$0xff pattern:$0x75316420] }
  0x34   :  { %v189_v8 = vsel %vm188_vm1, %v184_v6, 0.0  ;;  %v190_v9 = vsel %vm188_vm1, %v185_v7, 0.0  ;;  %v178_v42 = vld [vmem:[#allocation2] sm:$0x77]  ;;  %v262_v13 = vsub.f32 0.0, %v181_v11 }
  0x35   :  { %v191_v10 = vadd.f32 %v190_v9, %v189_v8  ;;  %v179_v43 = vld [vmem:[#allocation3] sm:$0x77] }
  0x36   :  { %v250_v48 = vsub.f32 %v178_v42, %v179_v43  ;;  %v263_v14 = vmul.f32 %v262_v13, %v259_v4 }
  0x37   :  { %192 = vadd.xlane.f32.xlu0 %v191_v10 }
  0x38   :  { %v251_v49 = vmul.f32 1.442695, %v250_v48 }
  0xaa   :  { %v193_v21 = vpop.xlane.xlu0 %192 }
  0xab   :  { %v194_v22 = vmul.f32 0.00390625, %v193_v21 }
  0xad   :  { %v199_v23 = vperm.slane %v194_v22, %v198_v20 }
  0xaf   :  { %v201_v24 = vsub.f32 %v180_v5, %v199_v23 }
  0xb1   :  { %v202_v25 = vmul.f32 %v201_v24, %v201_v24 }
  0xb3   :  { %204 = vst [vmem:[#allocation1] ss:$2 sm:$0xff] %v202_v25 }
  0xba   :  { %v205_v26 = vld.sshfl [vmem:[#allocation1] sm:$0xff pattern:$0x75316420]  ;;  %v206_v27 = vld.sshfl [vmem:[#allocation1 + $0x8] sm:$0xff pattern:$0x75316420] }
  0xbb   :  { %v209_v28 = vsel %vm188_vm1, %v205_v26, 0.0  ;;  %v210_v29 = vsel %vm188_vm1, %v206_v27, 0.0 }
  0xbc   :  { %v211_v30 = vadd.f32 %v210_v29, %v209_v28 }
  0xbe   :  { %212 = vadd.xlane.f32.xlu0 %v211_v30 }
 0x131   :  { %v213_v33 = vpop.xlane.xlu0 %212 }
 0x132   :  { %v214_v34 = vmul.f32 0.003921569, %v213_v33  ;;  %v341_v33 = vld [vmem:[%s859_s14] sm:$0x3] }
 0x134   :  { %438 = vrsqrt.f32 %v214_v34  ;;  %vm222_vm2 = vcmp.eq.f32.partialorder %v214_v34, inf  ;;  %v225_v44 = vand.u32 2147483648, %v214_v34  ;;  %vm224_vm3 = vcmp.eq.f32.partialorder %v214_v34, 0.0 }
 0x13a   :  { %v439_v35 = vpop.eup %438 }
 0x13b   :  { %v216_v36 = vmul.f32 %v439_v35, %v214_v34 }
 0x13d   :  { %v217_v37 = vmul.f32 %v439_v35, %v216_v36 }
 0x13f   :  { %v218_v38 = vmul.f32 0.5, %v217_v37  ;;  %v342_v37 = vld [vmem:[#allocation16] sm:$0x3] }
 0x141   :  { %v219_v39 = vsub.f32 1.5, %v218_v38  ;;  %v347_v38 = vsub.f32 %v340_v32, %v342_v37 }
 0x143   :  { %v220_v40 = vmul.f32 %v439_v35, %v219_v39 }
 0x145   :  { %v221_v41 = vmul.f32 %v220_v40, %v214_v34  ;;  %v349_v40 = vmul.f32 %v347_v38, %v347_v38 }
 0x147   :  { %v223_v45 = vsel %vm222_vm2, %v214_v34, %v221_v41  ;;  %v343_v34 = vsub.f32 %v340_v32, %v341_v33 }
 0x148   :  { %v226_v46 = vsel %vm224_vm3, %v225_v44, %v223_v45 }
 0x149   :  { %v227_v47 = vadd.f32 1e-08, %v226_v46  ;;  %v422_v35 = vclamps-f32 %v343_v34, 0.2 }
 0x14b   :  { %440 = vrcp.f32 %v227_v47  ;;  %v239_v55 = vand.u32 2147483648, %v227_v47  ;;  %v237_v57 = vand.u32 2147483647, %v227_v47  ;;  %vm233_vm5 = vweird.f32 %v227_v47 }
 0x14c   :  { %442 = vpow2.f32 %v251_v49  ;;  %v346_v36 = vadd.f32 %v422_v35, %v341_v33 }
 0x14d   :  { %v240_v62 = vor.u32 1.1754944e-38, %v239_v55  ;;  %vm238_vm8 = vcmp.eq.f32.partialorder %v237_v57, 8.507059e+37  ;;  %v309_v57 = vand.u32 127, %v143_v0 }
 0x14e   :  { %v348_v39 = vsub.f32 %v346_v36, %v342_v37 }
 0x14f   :  { %vm311_vm11 = vcmp.eq.s32.totalorder %v309_v57, 1  ;;  %vm310_vm12 = vcmp.eq.s32.totalorder %v309_v57, 0 }
 0x150   :  { %v350_v41 = vmul.f32 %v348_v39, %v348_v39 }
 0x151   :  { %v441_v50 = vpop.eup %440 }
 0x152   :  { %v229_v52 = vmul.f32 %v441_v50, %v227_v47  ;;  %vm234_vm4 = vweird.f32 %v441_v50  ;;  %v443_v58 = vpop.eup %442  ;;  %v351_v42 = vmax.f32 %v349_v40, %v350_v41 }
 0x153   :  { %vm235_vm6 = vmor %vm233_vm5, %vm234_vm4  ;;  %v265_v1 = vmax.f32 %v443_v58, 0.8  ;;  %v421_v17 = vadd.f32 -1.0, %v443_v58 }
 0x154   :  { %v230_v53 = vsub.f32 1.0, %v229_v52  ;;  %v352_v43 = vmul.f32 %v351_v42, %v821_v51 }
 0x155   :  { %v266_v6 = vmin.f32 %v265_v1, 1.2  ;;  %v295_v21 = vsub.f32 %v421_v17, %v250_v48 }
 0x156   :  { %v231_v56 = vmul.f32 %v441_v50, %v230_v53  ;;  %v354_v44 = vperm.slane %v352_v43, 0  ;;  %v355_v45 = vperm.slane %v352_v43, 1 }
 0x158   :  { %v232_v59 = vadd.f32 %v441_v50, %v231_v56  ;;  %v359_v46 = vsel %vm358_vm9, %v354_v44, 0.0  ;;  %v360_v47 = vsel %vm358_vm9, %v355_v45, 0.0 }
 0x159   :  { %v361_v48 = vadd.f32 %v360_v47, %v359_v46 }
 0x15a   :  { %v236_v63 = vsel %vm235_vm6, %v441_v50, %v232_v59  ;;  %v316_v50 = vld [vmem:[%s871_s20] sm:$0x7] }
 0x15b   :  { %v241_v2 = vsel %vm238_vm8, %v240_v62, %v236_v63  ;;  %362 = vadd.xlane.f32.xlu0 %v361_v48 }
 0x15c   :  { %v247_v3 = vperm.slane %v241_v2, %v198_v20 }
 0x15e   :  { %v249_v5 = vmul.f32 %v247_v3, %v201_v24 }
 0x160   :  { %v261_v7 = vmul.f32 %v259_v4, %v249_v5 }
 0x162   :  { %v264_v8 = vmul.f32 %v443_v58, %v261_v7  ;;  %v267_v9 = vmul.f32 %v266_v6, %v261_v7 }
 0x164   :  { %v268_v10 = vmin.f32 %v264_v8, %v267_v9 }
 0x166   :  { %v269_v12 = vsub.f32 0.0, %v268_v10 }
 0x168   :  { %271 = vst [vmem:[#allocation1] ss:$2 sm:$0xff] %v269_v12 }
 0x16f   :  { %v272_v15 = vld.sshfl [vmem:[#allocation1] sm:$0xff pattern:$0x75316420]  ;;  %v273_v16 = vld.sshfl [vmem:[#allocation1 + $0x8] sm:$0xff pattern:$0x75316420] }
 0x170   :  { %v276_v18 = vsel %vm188_vm1, %v272_v15, 0.0  ;;  %v277_v19 = vsel %vm188_vm1, %v273_v16, 0.0  ;;  %283 = vst [vmem:[#allocation1] ss:$2 sm:$0xff] %v263_v14 }
 0x171   :  { %v278_v20 = vadd.f32 %v277_v19, %v276_v18 }
 0x173   :  { %279 = vadd.xlane.f32.xlu1 %v278_v20 }
 0x177   :  { %v284_v22 = vld.sshfl [vmem:[#allocation1] sm:$0xff pattern:$0x75316420]  ;;  %v285_v23 = vld.sshfl [vmem:[#allocation1 + $0x8] sm:$0xff pattern:$0x75316420] }
 0x178   :  { %v288_v24 = vsel %vm188_vm1, %v284_v22, 0.0  ;;  %v289_v25 = vsel %vm188_vm1, %v285_v23, 0.0  ;;  %297 = vst [vmem:[#allocation1] ss:$2 sm:$0xff] %v295_v21 }
 0x179   :  { %v290_v26 = vadd.f32 %v289_v25, %v288_v24 }
 0x17b   :  { %291 = vadd.xlane.f32.xlu1 %v290_v26 }
 0x17f   :  { %v298_v27 = vld.sshfl [vmem:[#allocation1] sm:$0xff pattern:$0x75316420]  ;;  %v299_v28 = vld.sshfl [vmem:[#allocation1 + $0x8] sm:$0xff pattern:$0x75316420] }
 0x180   :  { %v302_v29 = vsel %vm188_vm1, %v298_v27, 0.0  ;;  %v303_v30 = vsel %vm188_vm1, %v299_v28, 0.0 }
 0x181   :  { %v304_v31 = vadd.f32 %v303_v30, %v302_v29 }
 0x183   :  { %305 = vadd.xlane.f32.xlu1 %v304_v31 }
 0x1ce   :  { %v363_v0 = vpop.xlane.xlu0 %362 }
 0x1cf   :  { %v364_v1 = vrot.slane %v363_v0, 4 }
 0x1d1   :  { %v365_v4 = vadd.f32 %v364_v1, %v363_v0 }
 0x1d3   :  { %v366_v7 = vrot.slane %v365_v4, 2 }
 0x1d5   :  { %v367_v13 = vadd.f32 %v366_v7, %v365_v4 }
 0x1d7   :  { %v368_v16 = vrot.slane %v367_v13, 1 }
 0x1d9   :  { %v369_v19 = vadd.f32 %v368_v16, %v367_v13 }
 0x1e6   :  { %v280_v49 = vpop.xlane.xlu1 %279 }
 0x1e7   :  { %v281_v52 = vmul.f32 0.00390625, %v280_v49 }
 0x1e9   :  { %v317_v53 = vmul.f32 %v316_v50, %v281_v52 }
 0x1eb   :  { %v319_v54 = vsel %vm318_vm10, %v317_v53, 0.0 }
 0x1ec   :  { %320 = vadd.xlane.f32.xlu2 %v319_v54 }
 0x1ee   :  { %v292_v55 = vpop.xlane.xlu1 %291 }
 0x1ef   :  { %v293_v56 = vmul.f32 0.00390625, %v292_v55 }
 0x1f1   :  { %v329_v51 = vmul.f32 %v316_v50, %v293_v56 }
 0x1f3   :  { %v330_v58 = vsel %vm318_vm10, %v329_v51, 0.0 }
 0x1f4   :  { %331 = vadd.xlane.f32.xlu2 %v330_v58 }
 0x1f6   :  { %v306_v59 = vpop.xlane.xlu1 %305 }
 0x1f7   :  { %v307_v60 = vmul.f32 0.00390625, %v306_v59 }
 0x1f9   :  { %v312_v61 = vsel %vm311_vm11, %v293_v56, %v307_v60 }
 0x1fa   :  { %v313_v62 = vsel %vm310_vm12, %v281_v52, %v312_v61 }
 0x1fb   :  { %315 = vst.msk [vmem:[#allocation18] sm:$0x7] %vm314_vm13, %v313_v62 }
 0x1fc   :  { %396 = dma.vmem_to_hbm [thread:$0]  %s392_s9, 64, %s394_s13, [#allocation8]  }
 0x25f   :  { %v321_v63 = vpop.xlane.xlu2 %320 }
 0x260   :  { %v322_v2 = vrot.slane %v321_v63, 4 }
 0x262   :  { %v323_v3 = vadd.f32 %v322_v2, %v321_v63 }
 0x264   :  { %v324_v5 = vrot.slane %v323_v3, 2 }
 0x266   :  { %v325_v6 = vadd.f32 %v324_v5, %v323_v3 }
 0x267   :  { %v332_v8 = vpop.xlane.xlu2 %331 }
 0x268   :  { %v333_v9 = vrot.slane %v332_v8, 4  ;;  %v326_v10 = vrot.slane %v325_v6, 1 }
 0x26a   :  { %v334_v11 = vadd.f32 %v333_v9, %v332_v8  ;;  %v327_v12 = vadd.f32 %v326_v10, %v325_v6 }
 0x26c   :  { %v335_v14 = vrot.slane %v334_v11, 2  ;;  %423 = vpush %v327_v12 }
 0x26e   :  { %v336_v15 = vadd.f32 %v335_v14, %v334_v11 }
 0x270   :  { %v337_v17 = vrot.slane %v336_v15, 1 }
 0x272   :  { %v338_v18 = vadd.f32 %v337_v17, %v336_v15 }
 0x274   :  { %425 = vpush %v338_v18 }
 0x275   :  { %427 = vpush %v369_v19 }
 0x29d   :  { %s424_s17 = spop %423 }
 0x29e   :  { %s372_s15 = smul.f32 0.33333334, %s424_s17 }
 0x2a0   :  { %381 = sst [smem:[#allocation19 + $0x1]] %s372_s15 }
 0x2a5   :  { %s426_s8 = spop %425 }
 0x2a6   :  { %s373_s23 = smul.f32 0.33333334, %s426_s8  ;;  %s428_s24 = spop %427 }
 0x2a7   :  { %s371_s7 = smul.f32 0.00390625, %s428_s24 }
 0x2a8   :  { %385 = sst [smem:[#allocation19 + $0x3]] %s373_s23  ;;  %s376_s28 = smul.f32 0.01, %s373_s23 }
 0x2a9   :  { %s374_s25 = smul.f32 0.5, %s371_s7  ;;  %383 = sst [smem:[#allocation19 + $0x2]] %s371_s7 }
 0x2ab   :  { %s375_s11 = sadd.f32 %s374_s25, %s372_s15 }
 0x2ad   :  { %s377_s29 = sadd.f32 %s376_s28, %s375_s11 }
 0x2af   :  { %379 = sst [smem:[#allocation19]] %s377_s29 }
 0x2b0   :  { %405 = dma.smem_to_hbm %s644_s3, 16, %s403_s10, [#allocation9]  }
 0x2b1   :  { %632 = dma.done.wait [#allocation8], 64  }
 0x2b2   :  { %633 = vsyncadd [#allocation8], 4294967232 }
 0x2b3   :  { %634 = dma.done.wait [#allocation9], 16  }
 0x2b4   :  { %635 = vsyncadd [#allocation9], 4294967280 }
 0x2b5   :  { %414 = sfence }
 0x2b6   :  { %415 = vsyncpa [#allocation7], 1 }
 0x2b7   :  { %416 = vsyncpa [#allocation11], 1 }
 0x2b8   :  { %417 = vsyncpa [#allocation14], 1 }
 0x2b9   :  { %418 = vsyncpa [#allocation17], 1 }
 0x2ba   :  { %419 = vsyncpa [#allocation8], 1 }
 0x2bb   :  { %420 = vsyncpa [#allocation9], 1 }

</bundles_post_ra>
